<compile_context>
chip_gen: v7x
topology: tpu7x:2x2x1
jax: 0.10.0
libtpu: 0.0.40
codegen_flags: <defaults>
</compile_context>

<pallas_src>
import functools

import jax
import jax.numpy as jnp
from jax.experimental import pallas as pl
from jax.experimental.pallas import tpu as pltpu

VMEM_SPEC = pl.BlockSpec(memory_space=pltpu.MemorySpace.VMEM)
LANE = 128           # TPU lane width; final (class) dim is padded to this
NEG_BIG = -1e30      # finite "-inf" for masking the padded class lanes
DENOM_FLOOR = 1e-30  # guard for the (underflow-only) all-zero-segment case


# ------------------------------ fused kernel --------------------------------

def _net_fused_kernel(x_ref, wmul_ref, ssrc_ref, sdst_ref, sdstt_ref,
                      wlin1_ref, blin1_ref, lp1_ref, ln1_ref, bm1_ref,
                      wlin2_ref, blin2_ref, lp2_ref, ln2_ref, bm2_ref,
                      out_ref, *, num_classes):
    x = x_ref[...]            # [N, F]
    wmul = wmul_ref[...]      # [E, 1]  edge curvature (shared by both layers)
    # bf16 0/1 operators -> upcast once; all dots then accumulate exact fp32.
    ssrc = ssrc_ref[...].astype(jnp.float32)    # [E, N] gather src
    sdst = sdst_ref[...].astype(jnp.float32)    # [E, N] gather dst
    sdstt = sdstt_ref[...].astype(jnp.float32)  # [N, E] scatter-add over dst

    def curvgn(feat, wlin, blin, lp, ln, bm2):
        # node linear: h = feat @ W + b
        h = jnp.dot(feat, wlin, preferred_element_type=jnp.float32) + blin  # [N,C]

        # rank-1 curvature MLP (lp/ln precomputed in the wrapper):
        #   w2 = LeakyReLU(wmul (x) wm1) @ wm2 + bm2
        #      = wmul * (wmul > 0 ? lp : ln) + bm2
        w2 = wmul * jnp.where(wmul > 0, lp, ln) + bm2                       # [E,C1]

        # segment softmax over destination node, shifted by the global
        # per-column max (constant per column -> cancels exactly in the
        # softmax; guarded denominator covers the underflow corner case).
        col_max = jnp.max(w2, axis=0, keepdims=True)                        # [1,C1]
        ew = jnp.exp(w2 - col_max)                                          # (0,1]
        denom_node = jnp.dot(sdstt, ew,
                             preferred_element_type=jnp.float32)            # [N,C1]
        denom_edge = jnp.dot(sdst, denom_node,
                             preferred_element_type=jnp.float32)            # [E,C1]
        alpha = ew * pl.reciprocal(jnp.maximum(denom_edge, DENOM_FLOOR),
                                   approx=True)                             # EUP slot

        # message passing: gather source features, weight, scatter-add to dst
        h_src = jnp.dot(ssrc, h, preferred_element_type=jnp.float32)        # [E,C]
        return jnp.dot(sdstt, alpha * h_src,
                       preferred_element_type=jnp.float32)                  # [N,C1]

    # conv1 -> ELU   (F.dropout(p=0.6) is identity in eval mode)
    # TODO(synk): training-mode dropout (random masking) intentionally omitted.
    h1 = curvgn(x, wlin1_ref[...], blin1_ref[...],
                lp1_ref[...], ln1_ref[...], bm1_ref[...])                   # [N,64]
    h1 = jnp.where(h1 > 0, h1, jnp.exp(jnp.minimum(h1, 0.0)) - 1.0)         # ELU

    # conv2 (class dim zero-padded to LANE) -> masked log_softmax over the
    # real classes; padded lanes contribute exp(.) == 0, wrapper slices them.
    h2 = curvgn(h1, wlin2_ref[...], blin2_ref[...],
                lp2_ref[...], ln2_ref[...], bm2_ref[...])                   # [N,LANE]
    col = jax.lax.broadcasted_iota(jnp.int32, h2.shape, 1)
    logits = jnp.where(col < num_classes, h2, NEG_BIG)
    s = logits - jnp.max(logits, axis=1, keepdims=True)
    lse = jnp.log(jnp.sum(jnp.exp(s), axis=1, keepdims=True))
    out_ref[...] = s - lse                                                  # lane-dense store


# ------------------------------ JAX wrappers --------------------------------

def init_curvgn_params(key, in_c, out_c, out_c1):
    k1, k2, k3 = jax.random.split(key, 3)
    return {
        "wlin": jax.random.normal(k1, (in_c, out_c), jnp.float32) / jnp.sqrt(in_c),
        "blin": jnp.zeros((1, out_c), jnp.float32),
        "wm1": jax.random.normal(k2, (1, out_c), jnp.float32),
        "wm2": jax.random.normal(k3, (out_c, out_c1), jnp.float32) / jnp.sqrt(out_c),
        "bm2": jnp.zeros((1, out_c1), jnp.float32),
    }


def _mlp_rank1(p):
    """Fold the rank-1 curvature MLP into two [1, C1] vectors (exact)."""
    wm1, wm2 = p["wm1"], p["wm2"]
    lp = jnp.where(wm1 > 0, wm1, 0.2 * wm1) @ wm2     # branch used when wmul > 0
    ln = jnp.where(wm1 < 0, wm1, 0.2 * wm1) @ wm2     # branch used when wmul <= 0
    return lp, ln


def _vmem_limit_bytes(resident_bytes):
    """Generation-aware VMEM budget: ~75% of physical (v7x 64MiB -> ~48MiB,
    v5e/v6e 128MiB -> ~96MiB), never requesting more than actually needed."""
    try:
        cap = int(pltpu.get_tpu_info().vmem_capacity_bytes)
    except Exception:  # pragma: no cover - fall back to smallest generation
        cap = 64 * 1024 * 1024
    budget = (cap * 3) // 4
    need = 2 * resident_bytes + (8 << 20)   # inputs/outputs + intermediate headroom
    return int(min(budget, max(need, 16 << 20)))


def _cost_estimate(n, e, feat, hidden, c_pad, in_bytes, out_bytes):
    def mm(a, k, b):
        return 2 * a * k * b
    flops = 0
    for cin, cout in ((feat, hidden), (hidden, c_pad)):
        flops += mm(n, cin, cout)          # feat @ wlin
        flops += 2 * mm(e, n, cout)        # denom gather, x_j gather
        flops += 2 * mm(n, e, cout)        # denom scatter, message scatter
        flops += 8 * e * cout              # elementwise (w2, ew, alpha, weighting)
    transcend = 2 * e * (hidden + c_pad)   # exp + approx reciprocal, both layers
    transcend += n * hidden + n * c_pad    # ELU + log_softmax exps
    return pl.CostEstimate(flops=int(flops), transcendentals=int(transcend),
                           bytes_accessed=int(in_bytes + out_bytes))


@jax.jit
def net_forward(x, w_mul, s_src, s_dst, s_dst_t, p1, p2):
    n, e = s_dst_t.shape
    feat = x.shape[1]
    hidden = p1["wm2"].shape[1]
    num_classes = p2["wm2"].shape[1]
    c_pad = max(LANE, ((num_classes + LANE - 1) // LANE) * LANE)

    # rank-1 curvature-MLP folding (exact) + zero-pad conv2's class dims
    lp1, ln1 = _mlp_rank1(p1)
    lp2, ln2 = _mlp_rank1(p2)
    pad_c = lambda a: jnp.pad(a, ((0, 0), (0, c_pad - a.shape[1])))

    # bf16 one-hot operators: 0/1 is exact in bf16, halves DMA of the three
    # largest inputs; matmuls still accumulate in fp32 inside the kernel.
    s_src_b = s_src.astype(jnp.bfloat16)
    s_dst_b = s_dst.astype(jnp.bfloat16)
    s_dst_t_b = s_dst_t.astype(jnp.bfloat16)

    args = (x, w_mul, s_src_b, s_dst_b, s_dst_t_b,
            p1["wlin"], p1["blin"], lp1, ln1, p1["bm2"],
            pad_c(p2["wlin"]), pad_c(p2["blin"]),
            pad_c(lp2), pad_c(ln2), pad_c(p2["bm2"]))
    in_bytes = sum(a.size * a.dtype.itemsize for a in args)
    out_bytes = n * c_pad * 4

    out_padded = pl.pallas_call(
        functools.partial(_net_fused_kernel, num_classes=num_classes),
        out_shape=jax.ShapeDtypeStruct((n, c_pad), jnp.float32),
        in_specs=[VMEM_SPEC] * len(args),
        out_specs=VMEM_SPEC,
        compiler_params=pltpu.CompilerParams(
            vmem_limit_bytes=_vmem_limit_bytes(in_bytes + out_bytes)),
        cost_estimate=_cost_estimate(n, e, feat, hidden, c_pad,
                                     in_bytes, out_bytes),
    )(*args)
    return out_padded[:, :num_classes]


# ------------------ pure-JAX reference (PyG semantics, fp32) ----------------

def _ref_forward(x, w_mul, src, dst, num_nodes, p1, p2):
    def layer(feat, p):
        h = feat @ p["wlin"] + p["blin"]
        w1 = w_mul * p["wm1"]
        w1 = jnp.where(w1 > 0, w1, 0.2 * w1)
        w2 = w1 @ p["wm2"] + p["bm2"]
        seg_max = jax.ops.segment_max(w2, dst, num_segments=num_nodes)
        ew = jnp.exp(w2 - seg_max[dst])
        denom = jax.ops.segment_sum(ew, dst, num_segments=num_nodes)
        alpha = ew / denom[dst]
        return jax.ops.segment_sum(alpha * h[src], dst, num_segments=num_nodes)

    h = layer(x, p1)
    h = jnp.where(h > 0, h, jnp.exp(h) - 1.0)
    h = layer(h, p2)
    return jax.nn.log_softmax(h, axis=1)


if __name__ == "__main__":
    N, E = 32, 64                     # nodes, edges
    NUM_FEATURES, HIDDEN, NUM_CLASSES = 16, 64, 8

    key = jax.random.PRNGKey(0)
    kx, ke1, ke2, kw, kp1, kp2 = jax.random.split(key, 6)

    x = jax.random.normal(kx, (N, NUM_FEATURES), jnp.float32)
    src = jax.random.randint(ke1, (E,), 0, N, jnp.int32)
    dst = jax.random.randint(ke2, (E,), 0, N, jnp.int32)
    edge_index = jnp.stack([src, dst])                               # [2, E]
    w_mul = jax.random.uniform(kw, (E, 1), jnp.float32, -1.0, 1.0)   # edge curvature

    # dense one-hot gather/scatter operators (glue, plain JAX)
    s_src = jax.nn.one_hot(edge_index[0], N, dtype=jnp.float32)      # [E, N]
    s_dst = jax.nn.one_hot(edge_index[1], N, dtype=jnp.float32)      # [E, N]
    s_dst_t = s_dst.T                                                # [N, E]

    p1 = init_curvgn_params(kp1, NUM_FEATURES, HIDDEN, HIDDEN)       # curvGN(F,64,64)
    p2 = init_curvgn_params(kp2, HIDDEN, NUM_CLASSES, NUM_CLASSES)   # curvGN(64,C,C)

    out = net_forward(x, w_mul, s_src, s_dst, s_dst_t, p1, p2)
    out = jax.block_until_ready(out)

    ref = _ref_forward(x, w_mul, edge_index[0], edge_index[1], N, p1, p2)

    assert out.shape == (N, NUM_CLASSES)
    assert bool(jnp.all(jnp.isfinite(out)))
    # probabilities sum to 1 per node
    assert bool(jnp.allclose(jnp.sum(jnp.exp(out), axis=1), 1.0, atol=1e-3))
    # tolerance covers the EUP approximate reciprocal used for 1/denominator
    assert bool(jnp.allclose(out, ref, rtol=5e-3, atol=5e-3))

    print("KERNEL_OK")
</pallas_src>

<mosaic_0001>
module attributes {stable_mosaic.version = 11 : i64} {
  func.func @_net_fused_kernel(%arg0: memref<32x16xf32, #tpu.memory_space<vmem>>, %arg1: memref<64x1xf32, #tpu.memory_space<vmem>>, %arg2: memref<64x32xbf16, #tpu.memory_space<vmem>>, %arg3: memref<64x32xbf16, #tpu.memory_space<vmem>>, %arg4: memref<32x64xbf16, #tpu.memory_space<vmem>>, %arg5: memref<16x64xf32, #tpu.memory_space<vmem>>, %arg6: memref<1x64xf32, #tpu.memory_space<vmem>>, %arg7: memref<1x64xf32, #tpu.memory_space<vmem>>, %arg8: memref<1x64xf32, #tpu.memory_space<vmem>>, %arg9: memref<1x64xf32, #tpu.memory_space<vmem>>, %arg10: memref<64x128xf32, #tpu.memory_space<vmem>>, %arg11: memref<1x128xf32, #tpu.memory_space<vmem>>, %arg12: memref<1x128xf32, #tpu.memory_space<vmem>>, %arg13: memref<1x128xf32, #tpu.memory_space<vmem>>, %arg14: memref<1x128xf32, #tpu.memory_space<vmem>>, %arg15: memref<32x128xf32, #tpu.memory_space<vmem>>) attributes {dimension_semantics = [], scalar_prefetch = 0 : i64, scratch_operands = 0 : i64, tpu.core_type = #tpu.core_type<tc>} {
    %c0 = arith.constant 0 : index
    %c0_0 = arith.constant 0 : index
    %0 = vector.load %arg0[%c0, %c0_0] : memref<32x16xf32, #tpu.memory_space<vmem>>, vector<32x16xf32>
    %c0_1 = arith.constant 0 : index
    %c0_2 = arith.constant 0 : index
    %1 = vector.load %arg1[%c0_1, %c0_2] : memref<64x1xf32, #tpu.memory_space<vmem>>, vector<64x1xf32>
    %c0_3 = arith.constant 0 : index
    %c0_4 = arith.constant 0 : index
    %2 = vector.load %arg2[%c0_3, %c0_4] : memref<64x32xbf16, #tpu.memory_space<vmem>>, vector<64x32xbf16>
    %3 = arith.extf %2 : vector<64x32xbf16> to vector<64x32xf32>
    %c0_5 = arith.constant 0 : index
    %c0_6 = arith.constant 0 : index
    %4 = vector.load %arg3[%c0_5, %c0_6] : memref<64x32xbf16, #tpu.memory_space<vmem>>, vector<64x32xbf16>
    %5 = arith.extf %4 : vector<64x32xbf16> to vector<64x32xf32>
    %c0_7 = arith.constant 0 : index
    %c0_8 = arith.constant 0 : index
    %6 = vector.load %arg4[%c0_7, %c0_8] : memref<32x64xbf16, #tpu.memory_space<vmem>>, vector<32x64xbf16>
    %7 = arith.extf %6 : vector<32x64xbf16> to vector<32x64xf32>
    %c0_9 = arith.constant 0 : index
    %c0_10 = arith.constant 0 : index
    %8 = vector.load %arg5[%c0_9, %c0_10] : memref<16x64xf32, #tpu.memory_space<vmem>>, vector<16x64xf32>
    %c0_11 = arith.constant 0 : index
    %c0_12 = arith.constant 0 : index
    %9 = vector.load %arg6[%c0_11, %c0_12] : memref<1x64xf32, #tpu.memory_space<vmem>>, vector<1x64xf32>
    %c0_13 = arith.constant 0 : index
    %c0_14 = arith.constant 0 : index
    %10 = vector.load %arg7[%c0_13, %c0_14] : memref<1x64xf32, #tpu.memory_space<vmem>>, vector<1x64xf32>
    %c0_15 = arith.constant 0 : index
    %c0_16 = arith.constant 0 : index
    %11 = vector.load %arg8[%c0_15, %c0_16] : memref<1x64xf32, #tpu.memory_space<vmem>>, vector<1x64xf32>
    %c0_17 = arith.constant 0 : index
    %c0_18 = arith.constant 0 : index
    %12 = vector.load %arg9[%c0_17, %c0_18] : memref<1x64xf32, #tpu.memory_space<vmem>>, vector<1x64xf32>
    %cst = arith.constant dense<0.000000e+00> : vector<32x64xf32>
    %13 = tpu.matmul %0, %8, %cst {dimension_numbers = #tpu.dot_dimension_numbers<[1], [0], [0], [1], [0, 0, 1, 1], [], []>} : vector<32x16xf32>, vector<16x64xf32>, vector<32x64xf32> -> vector<32x64xf32>
    %14 = vector.broadcast %9 : vector<1x64xf32> to vector<32x64xf32>
    %15 = arith.addf %13, %14 : vector<32x64xf32>
    %cst_19 = arith.constant 0.000000e+00 : f32
    %16 = vector.broadcast %cst_19 : f32 to vector<64x1xf32>
    %17 = arith.cmpf ogt, %1, %16 : vector<64x1xf32>
    %18 = vector.shape_cast %17 : vector<64x1xi1> to vector<64x1xi1>
    %19 = vector.broadcast %18 : vector<64x1xi1> to vector<64x64xi1>
    %20 = vector.shape_cast %10 : vector<1x64xf32> to vector<1x64xf32>
    %21 = vector.broadcast %20 : vector<1x64xf32> to vector<64x64xf32>
    %22 = vector.shape_cast %11 : vector<1x64xf32> to vector<1x64xf32>
    %23 = vector.broadcast %22 : vector<1x64xf32> to vector<64x64xf32>
    %24 = arith.select %19, %21, %23 : vector<64x64xi1>, vector<64x64xf32>
    %25 = vector.broadcast %1 : vector<64x1xf32> to vector<64x64xf32>
    %26 = arith.mulf %25, %24 : vector<64x64xf32>
    %27 = vector.broadcast %12 : vector<1x64xf32> to vector<64x64xf32>
    %28 = arith.addf %26, %27 : vector<64x64xf32>
    %cst_20 = arith.constant dense<0xFF800000> : vector<64xf32>
    %29 = vector.multi_reduction <maximumf>, %28, %cst_20 [0] : vector<64x64xf32> to vector<64xf32>
    %30 = vector.shape_cast %29 : vector<64xf32> to vector<1x64xf32>
    %31 = vector.broadcast %30 : vector<1x64xf32> to vector<64x64xf32>
    %32 = arith.subf %28, %31 : vector<64x64xf32>
    %33 = math.exp %32 : vector<64x64xf32>
    %cst_21 = arith.constant dense<0.000000e+00> : vector<32x64xf32>
    %34 = tpu.matmul %7, %33, %cst_21 {dimension_numbers = #tpu.dot_dimension_numbers<[1], [0], [0], [1], [0, 0, 1, 1], [], []>} : vector<32x64xf32>, vector<64x64xf32>, vector<32x64xf32> -> vector<32x64xf32>
    %cst_22 = arith.constant dense<0.000000e+00> : vector<64x64xf32>
    %35 = tpu.matmul %5, %34, %cst_22 {dimension_numbers = #tpu.dot_dimension_numbers<[1], [0], [0], [1], [0, 0, 1, 1], [], []>} : vector<64x32xf32>, vector<32x64xf32>, vector<64x64xf32> -> vector<64x64xf32>
    %cst_23 = arith.constant 1.000000e-30 : f32
    %36 = vector.broadcast %cst_23 : f32 to vector<64x64xf32>
    %37 = arith.maximumf %35, %36 : vector<64x64xf32>
    %38 = tpu.reciprocal %37 {approx = true} : vector<64x64xf32> -> vector<64x64xf32>
    %39 = arith.mulf %33, %38 : vector<64x64xf32>
    %cst_24 = arith.constant dense<0.000000e+00> : vector<64x64xf32>
    %40 = tpu.matmul %3, %15, %cst_24 {dimension_numbers = #tpu.dot_dimension_numbers<[1], [0], [0], [1], [0, 0, 1, 1], [], []>} : vector<64x32xf32>, vector<32x64xf32>, vector<64x64xf32> -> vector<64x64xf32>
    %41 = arith.mulf %39, %40 : vector<64x64xf32>
    %cst_25 = arith.constant dense<0.000000e+00> : vector<32x64xf32>
    %42 = tpu.matmul %7, %41, %cst_25 {dimension_numbers = #tpu.dot_dimension_numbers<[1], [0], [0], [1], [0, 0, 1, 1], [], []>} : vector<32x64xf32>, vector<64x64xf32>, vector<32x64xf32> -> vector<32x64xf32>
    %cst_26 = arith.constant 0.000000e+00 : f32
    %43 = vector.broadcast %cst_26 : f32 to vector<32x64xf32>
    %44 = arith.cmpf ogt, %42, %43 : vector<32x64xf32>
    %cst_27 = arith.constant 0.000000e+00 : f32
    %45 = vector.broadcast %cst_27 : f32 to vector<32x64xf32>
    %46 = arith.minimumf %42, %45 : vector<32x64xf32>
    %47 = math.exp %46 : vector<32x64xf32>
    %cst_28 = arith.constant 1.000000e+00 : f32
    %48 = vector.broadcast %cst_28 : f32 to vector<32x64xf32>
    %49 = arith.subf %47, %48 : vector<32x64xf32>
    %50 = arith.select %44, %42, %49 : vector<32x64xi1>, vector<32x64xf32>
    %c0_29 = arith.constant 0 : index
    %c0_30 = arith.constant 0 : index
    %51 = vector.load %arg10[%c0_29, %c0_30] : memref<64x128xf32, #tpu.memory_space<vmem>>, vector<64x128xf32>
    %c0_31 = arith.constant 0 : index
    %c0_32 = arith.constant 0 : index
    %52 = vector.load %arg11[%c0_31, %c0_32] : memref<1x128xf32, #tpu.memory_space<vmem>>, vector<1x128xf32>
    %c0_33 = arith.constant 0 : index
    %c0_34 = arith.constant 0 : index
    %53 = vector.load %arg12[%c0_33, %c0_34] : memref<1x128xf32, #tpu.memory_space<vmem>>, vector<1x128xf32>
    %c0_35 = arith.constant 0 : index
    %c0_36 = arith.constant 0 : index
    %54 = vector.load %arg13[%c0_35, %c0_36] : memref<1x128xf32, #tpu.memory_space<vmem>>, vector<1x128xf32>
    %c0_37 = arith.constant 0 : index
    %c0_38 = arith.constant 0 : index
    %55 = vector.load %arg14[%c0_37, %c0_38] : memref<1x128xf32, #tpu.memory_space<vmem>>, vector<1x128xf32>
    %cst_39 = arith.constant dense<0.000000e+00> : vector<32x128xf32>
    %56 = tpu.matmul %50, %51, %cst_39 {dimension_numbers = #tpu.dot_dimension_numbers<[1], [0], [0], [1], [0, 0, 1, 1], [], []>} : vector<32x64xf32>, vector<64x128xf32>, vector<32x128xf32> -> vector<32x128xf32>
    %57 = vector.broadcast %52 : vector<1x128xf32> to vector<32x128xf32>
    %58 = arith.addf %56, %57 : vector<32x128xf32>
    %cst_40 = arith.constant 0.000000e+00 : f32
    %59 = vector.broadcast %cst_40 : f32 to vector<64x1xf32>
    %60 = arith.cmpf ogt, %1, %59 : vector<64x1xf32>
    %61 = vector.shape_cast %60 : vector<64x1xi1> to vector<64x1xi1>
    %62 = vector.broadcast %61 : vector<64x1xi1> to vector<64x128xi1>
    %63 = vector.shape_cast %53 : vector<1x128xf32> to vector<1x128xf32>
    %64 = vector.broadcast %63 : vector<1x128xf32> to vector<64x128xf32>
    %65 = vector.shape_cast %54 : vector<1x128xf32> to vector<1x128xf32>
    %66 = vector.broadcast %65 : vector<1x128xf32> to vector<64x128xf32>
    %67 = arith.select %62, %64, %66 : vector<64x128xi1>, vector<64x128xf32>
    %68 = vector.broadcast %1 : vector<64x1xf32> to vector<64x128xf32>
    %69 = arith.mulf %68, %67 : vector<64x128xf32>
    %70 = vector.broadcast %55 : vector<1x128xf32> to vector<64x128xf32>
    %71 = arith.addf %69, %70 : vector<64x128xf32>
    %cst_41 = arith.constant dense<0xFF800000> : vector<128xf32>
    %72 = vector.multi_reduction <maximumf>, %71, %cst_41 [0] : vector<64x128xf32> to vector<128xf32>
    %73 = vector.shape_cast %72 : vector<128xf32> to vector<1x128xf32>
    %74 = vector.broadcast %73 : vector<1x128xf32> to vector<64x128xf32>
    %75 = arith.subf %71, %74 : vector<64x128xf32>
    %76 = math.exp %75 : vector<64x128xf32>
    %cst_42 = arith.constant dense<0.000000e+00> : vector<32x128xf32>
    %77 = tpu.matmul %7, %76, %cst_42 {dimension_numbers = #tpu.dot_dimension_numbers<[1], [0], [0], [1], [0, 0, 1, 1], [], []>} : vector<32x64xf32>, vector<64x128xf32>, vector<32x128xf32> -> vector<32x128xf32>
    %cst_43 = arith.constant dense<0.000000e+00> : vector<64x128xf32>
    %78 = tpu.matmul %5, %77, %cst_43 {dimension_numbers = #tpu.dot_dimension_numbers<[1], [0], [0], [1], [0, 0, 1, 1], [], []>} : vector<64x32xf32>, vector<32x128xf32>, vector<64x128xf32> -> vector<64x128xf32>
    %cst_44 = arith.constant 1.000000e-30 : f32
    %79 = vector.broadcast %cst_44 : f32 to vector<64x128xf32>
    %80 = arith.maximumf %78, %79 : vector<64x128xf32>
    %81 = tpu.reciprocal %80 {approx = true} : vector<64x128xf32> -> vector<64x128xf32>
    %82 = arith.mulf %76, %81 : vector<64x128xf32>
    %cst_45 = arith.constant dense<0.000000e+00> : vector<64x128xf32>
    %83 = tpu.matmul %3, %58, %cst_45 {dimension_numbers = #tpu.dot_dimension_numbers<[1], [0], [0], [1], [0, 0, 1, 1], [], []>} : vector<64x32xf32>, vector<32x128xf32>, vector<64x128xf32> -> vector<64x128xf32>
    %84 = arith.mulf %82, %83 : vector<64x128xf32>
    %cst_46 = arith.constant dense<0.000000e+00> : vector<32x128xf32>
    %85 = tpu.matmul %7, %84, %cst_46 {dimension_numbers = #tpu.dot_dimension_numbers<[1], [0], [0], [1], [0, 0, 1, 1], [], []>} : vector<32x64xf32>, vector<64x128xf32>, vector<32x128xf32> -> vector<32x128xf32>
    %86 = tpu.iota {dimensions = array<i32: 1>} : vector<32x128xi32>
    %c8_i32 = arith.constant 8 : i32
    %87 = vector.broadcast %c8_i32 : i32 to vector<32x128xi32>
    %88 = arith.cmpi slt, %86, %87 : vector<32x128xi32>
    %cst_47 = arith.constant -1.000000e+30 : f32
    %89 = vector.broadcast %cst_47 : f32 to vector<32x128xf32>
    %90 = arith.select %88, %85, %89 : vector<32x128xi1>, vector<32x128xf32>
    %cst_48 = arith.constant dense<0xFF800000> : vector<32xf32>
    %91 = vector.multi_reduction <maximumf>, %90, %cst_48 [1] : vector<32x128xf32> to vector<32xf32>
    %92 = vector.shape_cast %91 : vector<32xf32> to vector<32x1xf32>
    %93 = vector.broadcast %92 : vector<32x1xf32> to vector<32x128xf32>
    %94 = arith.subf %90, %93 : vector<32x128xf32>
    %95 = math.exp %94 : vector<32x128xf32>
    %cst_49 = arith.constant dense<0.000000e+00> : vector<32xf32>
    %96 = vector.multi_reduction <add>, %95, %cst_49 [1] : vector<32x128xf32> to vector<32xf32>
    %97 = vector.shape_cast %96 : vector<32xf32> to vector<32x1xf32>
    %98 = math.log %97 : vector<32x1xf32>
    %99 = vector.broadcast %98 : vector<32x1xf32> to vector<32x128xf32>
    %100 = arith.subf %94, %99 : vector<32x128xf32>
    %c0_50 = arith.constant 0 : index
    %c0_51 = arith.constant 0 : index
    %101 = vector.load %arg15[%c0_50, %c0_51] : memref<32x128xf32, #tpu.memory_space<vmem>>, vector<32x128xf32>
    tpu.vector_store %arg15[%c0_50, %c0_51], %100 {strides = array<i32>} : memref<32x128xf32, #tpu.memory_space<vmem>>, vector<32x128xf32>,
    return
  }
}

</mosaic_0001>

<bundles_post_ra>
// kernel: net_forward.1
= control target key start
LH: loop header
LB: loop body
LE: loop exit
PB: predicated region body
PF: predicated region fallthrough
CT: control target
= control target key end

     0   :  { %v2182_v0 = vmov 0   ;;  %vm342_vm8 = vcmask 523264   ;;  %vm114_vm9 = vcmask 130048   ;;  %s2756_s1 = inlined_call_operand.vmem [shape: f32[64,1], index: 1, kind: input, shape index: {}]   ;;  %s2757_s4 = inlined_call_operand.vmem [shape: bf16[32,64], index: 4, kind: input, shape index: {}]   ;;  %s2758_s5 = inlined_call_operand.vmem [shape: f32[16,64], index: 5, kind: input, shape index: {}]   ;;  %s2759_s0 = inlined_call_operand.vmem [shape: f32[32,16], index: 0, kind: input, shape index: {}]   ;;  %s2760_s12 = inlined_call_operand.vmem [shape: f32[1,128], index: 12, kind: input, shape index: {}]   ;;  %s2761_s13 = inlined_call_operand.vmem [shape: f32[1,128], index: 13, kind: input, shape index: {}]   ;;  %s2762_s7 = inlined_call_operand.vmem [shape: f32[1,64], index: 7, kind: input, shape index: {}]   ;;  %s2763_s8 = inlined_call_operand.vmem [shape: f32[1,64], index: 8, kind: input, shape index: {}]   ;;  %s2764_s9 = inlined_call_operand.vmem [shape: f32[1,64], index: 9, kind: input, shape index: {}]   ;;  %s2765_s14 = inlined_call_operand.vmem [shape: f32[1,128], index: 14, kind: input, shape index: {}]   ;;  %s2766_s6 = inlined_call_operand.vmem [shape: f32[1,64], index: 6, kind: input, shape index: {}]   ;;  %s2767_s3 = inlined_call_operand.vmem [shape: bf16[64,32], index: 3, kind: input, shape index: {}]   ;;  %s2768_s2 = inlined_call_operand.vmem [shape: bf16[64,32], index: 2, kind: input, shape index: {}]   ;;  %s2769_s10 = inlined_call_operand.vmem [shape: f32[64,128], index: 10, kind: input, shape index: {}]   ;;  %s2770_s11 = inlined_call_operand.vmem [shape: f32[1,128], index: 11, kind: input, shape index: {}]   ;;  %s2771_s15 = inlined_call_operand.vmem [shape: f32[32,128], index: 15, kind: output, shape index: {}]  }
   0x1   :  { %2093 = vset.pattern.permute.xlu1 %v2182_v0  ;;  %2092 = vset.pattern.permute.xlu0 %v2182_v0  ;;  %v56_v1 = vld [vmem:[%s2756_s1 + $0x10] sm:$0xff]  ;;  %v54_v2 = vld [vmem:[%s2756_s1] sm:$0xff]  ;;  %v57_v3 = vld [vmem:[%s2756_s1 + $0x18] sm:$0xff] }
   0x2   :  { %vm214_vm0 = vcmp.gt.f32.partialorder %v56_v1, 0.0  ;;  %vm212_vm1 = vcmp.gt.f32.partialorder %v54_v2, 0.0  ;;  %vm215_vm2 = vcmp.gt.f32.partialorder %v57_v3, 0.0  ;;  %v55_v4 = vld [vmem:[%s2756_s1 + $0x8] sm:$0xff]  ;;  %v58_v8 = vld [vmem:[%s2756_s1 + $0x20] sm:$0xff]  ;;  %v61_v11 = vld [vmem:[%s2756_s1 + $0x38] sm:$0xff] }
   0x3   :  { %v222_v5 = vsel %vm214_vm0, 1, %v2182_v0  ;;  %v220_v6 = vsel %vm212_vm1, 1, %v2182_v0  ;;  %vm213_vm3 = vcmp.gt.f32.partialorder %v55_v4, 0.0  ;;  %v59_v7 = vld [vmem:[%s2756_s1 + $0x28] sm:$0xff]  ;;  %v223_v9 = vsel %vm215_vm2, 1, %v2182_v0  ;;  %v60_v12 = vld [vmem:[%s2756_s1 + $0x30] sm:$0xff] }
   0x4   :  { %235 = vperm.xlu1 %2093, %v222_v5   ;;  %229 = vperm.xlu0 %2092, %v220_v6   ;;  %v221_v10 = vsel %vm213_vm3, 1, %v2182_v0  ;;  %vm217_vm4 = vcmp.gt.f32.partialorder %v59_v7, 0.0  ;;  %vm216_vm5 = vcmp.gt.f32.partialorder %v58_v8, 0.0  ;;  %vm219_vm6 = vcmp.gt.f32.partialorder %v61_v11, 0.0  ;;  %v2290_v17 = vld [vmem:[%s2757_s4] sm:$0xff]   ;;  %v103_v20 = vld [vmem:[%s2758_s5 + $0x8] sm:$0xff] }
   0x5   :  { %v225_v13 = vsel %vm217_vm4, 1, %v2182_v0  ;;  %v224_v14 = vsel %vm216_vm5, 1, %v2182_v0  ;;  %vm218_vm7 = vcmp.gt.f32.partialorder %v60_v12, 0.0  ;;  %v227_v15 = vsel %vm219_vm6, 1, %v2182_v0  ;;  %v102_v19 = vld [vmem:[%s2758_s5] sm:$0xff]  ;;  %v51_v23 = vld [vmem:[%s2759_s0 + $0x8] sm:$0xff] }
   0x6   :  { %v226_v16 = vsel %vm218_vm7, 1, %v2182_v0  ;;  %v2293_v18 = vunpack.c.l.bf16 %v2290_v17  ;;  %v50_v21 = vld [vmem:[%s2759_s0] sm:$0xff]  ;;  %v1975_v22 = vpack.c.bf16 %v103_v20, %v102_v19  ;;  %v52_v24 = vld [vmem:[%s2759_s0 + $0x10] sm:$0xff]  ;;  %v53_v25 = vld [vmem:[%s2759_s0 + $0x18] sm:$0xff]  ;;  %vm485_vm2 = vcmask 261120  }
   0x7   :  { %1779 = vmatprep.mubr.msk.f32.mxu0 %vm114_vm9, %v50_v21  ;;  %v1587_v34 = vld [vmem:[%s2760_s12] ss:$0 sm:$0xff] }
   0x8   :  { %238 = vperm.xlu1 %2093, %v223_v9   ;;  %232 = vperm.xlu0 %2092, %v221_v10   ;;  %v1588_v35 = vld [vmem:[%s2761_s13] ss:$0 sm:$0xff] }
   0x9   :  { %1801 = vmatprep.mubr.msk.f32.mxu1 %vm342_vm8, %v2293_v18  ;;  %1976 = vmatprep.subr.bf16.mxu0 %v1975_v22  ;;  %v1551_v36 = vld [vmem:[%s2762_s7] ss:$0 sm:$0xff] }
   0xa   :  { %1978 = vmatpush3.bf16.msra.mxu0 %v1975_v22  ;;  %v1552_v37 = vld [vmem:[%s2763_s8] ss:$0 sm:$0xff] }
   0xb   :  { %v1553_v51 = vld [vmem:[%s2764_s9] ss:$0 sm:$0xff] }
   0xc   :  { %244 = vperm.xlu1 %2093, %v225_v13   ;;  %241 = vperm.xlu0 %2092, %v224_v14   ;;  %v1589_v60 = vld [vmem:[%s2765_s14] ss:$0 sm:$0xff] }
   0xd   :  { %1780 = vmatmul.mubr.msk.f32.vlgmr.msra.gmra.mrb[0].mxu0 %vm114_vm9, %v51_v23 }
   0xe   :  { %1782 = vmatprep.mubr.msk.f32.mxu0 %vm114_vm9, %v52_v24 }
  0x10   :  { %250 = vperm.xlu1 %2093, %v227_v15   ;;  %247 = vperm.xlu0 %2092, %v226_v16  }
  0x11   :  { %1783 = vmatmul.mubr.msk.f32.gmra.mrb[2].mxu0 %vm114_vm9, %v53_v25 }
  0x14   :  { %287 = vperm.xlu1 %2093, %v55_v4   ;;  %282 = vperm.xlu0 %2092, %v54_v2  }
  0x18   :  { %297 = vperm.xlu1 %2093, %v57_v3   ;;  %292 = vperm.xlu0 %2092, %v56_v1  }
  0x1c   :  { %307 = vperm.xlu1 %2093, %v59_v7   ;;  %302 = vperm.xlu0 %2092, %v58_v8  }
  0x20   :  { %317 = vperm.xlu1 %2093, %v61_v11   ;;  %312 = vperm.xlu0 %2092, %v60_v12  }
  0x83   :  { %v236_v26 = vpop.permute.xlu1 %235  ;;  %v230_v27 = vpop.permute.xlu0 %229 }
  0x84   :  { %vm252_vm10 = vcmp.eq.s32.totalorder %v230_v27, 1  ;;  %vm254_vm13 = vcmp.eq.s32.totalorder %v236_v26, 1 }
  0x85   :  { %v1012_v40 = vsel %vm252_vm10, %v1587_v34, %v1588_v35  ;;  %v272_v45 = vsel %vm252_vm10, %v1551_v36, %v1552_v37  ;;  %v1014_v53 = vsel %vm254_vm13, %v1587_v34, %v1588_v35  ;;  %v274_v55 = vsel %vm254_vm13, %v1551_v36, %v1552_v37 }
  0x87   :  { %v239_v28 = vpop.permute.xlu1 %238  ;;  %v233_v29 = vpop.permute.xlu0 %232 }
  0x88   :  { %vm253_vm11 = vcmp.eq.s32.totalorder %v233_v29, 1  ;;  %vm255_vm12 = vcmp.eq.s32.totalorder %v239_v28, 1 }
  0x89   :  { %v1013_v39 = vsel %vm253_vm11, %v1587_v34, %v1588_v35  ;;  %v273_v44 = vsel %vm253_vm11, %v1551_v36, %v1552_v37  ;;  %v1015_v46 = vsel %vm255_vm12, %v1587_v34, %v1588_v35  ;;  %v275_v54 = vsel %vm255_vm12, %v1551_v36, %v1552_v37 }
  0x8b   :  { %v245_v30 = vpop.permute.xlu1 %244  ;;  %v242_v31 = vpop.permute.xlu0 %241 }
  0x8c   :  { %vm257_vm14 = vcmp.eq.s32.totalorder %v245_v30, 1  ;;  %vm256_vm15 = vcmp.eq.s32.totalorder %v242_v31, 1 }
  0x8d   :  { %v277_v57 = vsel %vm257_vm14, %v1551_v36, %v1552_v37  ;;  %v1017_v58 = vsel %vm257_vm14, %v1587_v34, %v1588_v35  ;;  %v276_v59 = vsel %vm256_vm15, %v1551_v36, %v1552_v37  ;;  %v1016_v0 = vsel %vm256_vm15, %v1587_v34, %v1588_v35 }
  0x8f   :  { %v251_v32 = vpop.permute.xlu1 %250  ;;  %v2315_v33 = vpop.permute.xlu0 %247 }
  0x90   :  { %vm259_vm0 = vcmp.eq.s32.totalorder %v251_v32, 1  ;;  %vm258_vm1 = vcmp.eq.s32.totalorder %v2315_v33, 1 }
  0x91   :  { %v279_v2 = vsel %vm259_vm0, %v1551_v36, %v1552_v37  ;;  %v1019_v9 = vsel %vm259_vm0, %v1587_v34, %v1588_v35  ;;  %v278_v10 = vsel %vm258_vm1, %v1551_v36, %v1552_v37  ;;  %v1018_v21 = vsel %vm258_vm1, %v1587_v34, %v1588_v35 }
  0x93   :  { %v288_v38 = vpop.permute.xlu1 %287  ;;  %v283_v41 = vpop.permute.xlu0 %282 }
  0x94   :  { %v1021_v42 = vmul.f32 %v1013_v39, %v288_v38  ;;  %v1020_v43 = vmul.f32 %v1012_v40, %v283_v41  ;;  %v321_v47 = vmul.f32 %v288_v38, %v273_v44  ;;  %v320_v48 = vmul.f32 %v283_v41, %v272_v45 }
  0x96   :  { %v2347_v61 = vadd.f32 %v1553_v51, %v321_v47  ;;  %v2349_v62 = vadd.f32 %v1553_v51, %v320_v48  ;;  %v2356_v11 = vadd.f32 %v1589_v60, %v1021_v42  ;;  %v2366_v16 = vadd.f32 %v1589_v60, %v1020_v43 }
  0x97   :  { %v298_v49 = vpop.permute.xlu1 %297  ;;  %v293_v50 = vpop.permute.xlu0 %292 }
  0x98   :  { %v1023_v52 = vmul.f32 %v1015_v46, %v298_v49  ;;  %v1022_v56 = vmul.f32 %v1014_v53, %v293_v50  ;;  %v323_v3 = vmul.f32 %v298_v49, %v275_v54  ;;  %v322_v7 = vmul.f32 %v293_v50, %v274_v55 }
  0x99   :  { %v344_v15 = vsel %vm342_vm8, %v2347_v61, -inf  ;;  %v343_v23 = vsel %vm342_vm8, %v2349_v62, -inf }
  0x9a   :  { %v337_v24 = vadd.f32 %v1553_v51, %v323_v3  ;;  %v336_v27 = vadd.f32 %v1553_v51, %v322_v7  ;;  %v2384_v35 = vadd.f32 %v1589_v60, %v1023_v52  ;;  %v2386_v36 = vadd.f32 %v1589_v60, %v1022_v56 }
  0x9b   :  { %v308_v63 = vpop.permute.xlu1 %307  ;;  %v303_v1 = vpop.permute.xlu0 %302 }
  0x9c   :  { %v325_v4 = vmul.f32 %v308_v63, %v277_v57  ;;  %v1025_v5 = vmul.f32 %v1017_v58, %v308_v63  ;;  %v324_v6 = vmul.f32 %v303_v1, %v276_v59  ;;  %v1024_v8 = vmul.f32 %v1016_v0, %v303_v1 }
  0x9d   :  { %v346_v39 = vsel %vm342_vm8, %v337_v24, -inf  ;;  %v345_v47 = vsel %vm342_vm8, %v336_v27, -inf }
  0x9e   :  { %v2358_v12 = vadd.f32 %v1553_v51, %v325_v4  ;;  %v2360_v13 = vadd.f32 %v1589_v60, %v1025_v5  ;;  %v2362_v14 = vadd.f32 %v1553_v51, %v324_v6  ;;  %v2368_v19 = vadd.f32 %v1589_v60, %v1024_v8 }
  0x9f   :  { %v318_v20 = vpop.permute.xlu1 %317  ;;  %v313_v22 = vpop.permute.xlu0 %312 }
  0xa0   :  { %v1043_v25 = vmax.f32 %v2356_v11, %v2360_v13  ;;  %v327_v26 = vmul.f32 %v318_v20, %v279_v2  ;;  %v349_v28 = vsel %vm342_vm8, %v2358_v12, -inf  ;;  %v1042_v29 = vmax.f32 %v2366_v16, %v2368_v19 }
  0xa1   :  { %v1027_v30 = vmul.f32 %v1019_v9, %v318_v20  ;;  %v347_v31 = vsel %vm342_vm8, %v2362_v14, -inf  ;;  %v326_v33 = vmul.f32 %v313_v22, %v278_v10  ;;  %v1026_v34 = vmul.f32 %v1018_v21, %v313_v22 }
  0xa2   :  { %v2382_v32 = vadd.f32 %v1553_v51, %v327_v26  ;;  %v1046_v37 = vmax.f32 %v1042_v29, %v1043_v25  ;;  %v350_v43 = vmax.f32 %v344_v15, %v349_v28  ;;  %v348_v44 = vmax.f32 %v343_v23, %v347_v31 }
  0xa3   :  { %v2388_v38 = vadd.f32 %v1589_v60, %v1027_v30  ;;  %v340_v41 = vadd.f32 %v1553_v51, %v326_v33  ;;  %v2393_v42 = vadd.f32 %v1589_v60, %v1026_v34 }
  0xa4   :  { %v353_v40 = vsel %vm342_vm8, %v2382_v32, -inf  ;;  %v355_v53 = vmax.f32 %v348_v44, %v350_v43 }
  0xa5   :  { %v354_v45 = vmax.f32 %v346_v39, %v353_v40  ;;  %v1045_v46 = vmax.f32 %v2384_v35, %v2388_v38  ;;  %v351_v48 = vsel %vm342_vm8, %v340_v41, -inf  ;;  %v1044_v49 = vmax.f32 %v2386_v36, %v2393_v42 }
  0xa6   :  { %v352_v50 = vmax.f32 %v345_v47, %v351_v48 }
  0xa7   :  { %v1047_v52 = vmax.f32 %v1044_v49, %v1045_v46 }
  0xa8   :  { %v356_v54 = vmax.f32 %v352_v50, %v354_v45  ;;  %v1660_v50 = vld [vmem:[%s2757_s4 + $0x8] sm:$0xff]  }
  0xa9   :  { %v1048_v51 = vmax.f32 %v1046_v37, %v1047_v52  ;;  %v2452_v52 = vunpack.c.h.bf16 %v2290_v17  ;;  %v2470_v17 = vld [vmem:[%s2767_s3] sm:$0xff]  }
  0xaa   :  { %v357_v55 = vmax.f32 %v355_v53, %v356_v54  ;;  %v2454_v53 = vunpack.c.l.bf16 %v1660_v50  ;;  %v2458_v54 = vunpack.c.h.bf16 %v1660_v50  ;;  %v2538_v50 = vld [vmem:[%s2767_s3 + $0x10] sm:$0xff]  }
  0xab   :  { %v1049_v56 = vrot.slane %v1048_v51, 4 }
  0xac   :  { %v358_v57 = vrot.slane %v357_v55, 4 }
  0xad   :  { %v1050_v58 = vmax.f32 %v1048_v51, %v1049_v56  ;;  %v1546_v51 = vld [vmem:[%s2766_s6] ss:$0 sm:$0xff] }
  0xae   :  { %v359_v59 = vmax.f32 %v357_v55, %v358_v57  ;;  %v1632_v55 = vunpack.c.l.bf16 %v2470_v17 }
  0xaf   :  { %v1051_v60 = vrot.slane %v1050_v58, 2 }
  0xb0   :  { %v360_v63 = vrot.slane %v359_v59, 2  ;;  %1815 = vmatprep.mubr.msk.f32.mxu0 %vm485_vm2, %v1632_v55 }
  0xb1   :  { %v1052_v0 = vmax.f32 %v1050_v58, %v1051_v60 }
  0xb2   :  { %v361_v1 = vmax.f32 %v359_v59, %v360_v63 }
  0xb3   :  { %v1053_v2 = vrot.slane %v1052_v0, 1 }
  0xb4   :  { %v362_v3 = vrot.slane %v361_v1, 1 }
  0xb5   :  { %v2401_v4 = vmax.f32 %v1052_v0, %v1053_v2 }
  0xb6   :  { %v363_v5 = vmax.f32 %v361_v1, %v362_v3 }
  0xb7   :  { %v1061_v6 = vsub.f32 %v2393_v42, %v2401_v4  ;;  %v1055_v7 = vsub.f32 %v2366_v16, %v2401_v4  ;;  %v1056_v8 = vsub.f32 %v2356_v11, %v2401_v4  ;;  %v1057_v9 = vsub.f32 %v2386_v36, %v2401_v4 }
  0xb8   :  { %v364_v10 = vsub.f32 %v2349_v62, %v363_v5  ;;  %v365_v15 = vsub.f32 %v2347_v61, %v363_v5  ;;  %v366_v20 = vsub.f32 %v336_v27, %v363_v5  ;;  %v367_v21 = vsub.f32 %v337_v24, %v363_v5 }
  0xb9   :  { %v368_v22 = vsub.f32 %v2362_v14, %v363_v5  ;;  %v369_v23 = vsub.f32 %v2358_v12, %v363_v5  ;;  %v370_v29 = vsub.f32 %v340_v41, %v363_v5  ;;  %v371_v31 = vsub.f32 %v2382_v32, %v363_v5  ;;  %v2479_v5 = vld [vmem:[%s2768_s2] sm:$0xff]  }
  0xba   :  { %v372_v25 = vmul.f32 1.442695, %v364_v10  ;;  %v374_v26 = vmul.f32 1.442695, %v365_v15  ;;  %v376_v28 = vmul.f32 1.442695, %v366_v20  ;;  %v1058_v62 = vsub.f32 %v2384_v35, %v2401_v4 }
  0xbb   :  { %v378_v30 = vmul.f32 1.442695, %v367_v21  ;;  %v380_v33 = vmul.f32 1.442695, %v368_v22  ;;  %v382_v34 = vmul.f32 1.442695, %v369_v23  ;;  %v1059_v61 = vsub.f32 %v2368_v19, %v2401_v4 }
  0xbc   :  { %2094 = vpow2.f32 %v372_v25  ;;  %v1060_v12 = vsub.f32 %v2360_v13, %v2401_v4  ;;  %v1062_v14 = vsub.f32 %v2388_v38, %v2401_v4  ;;  %v384_v24 = vmul.f32 1.442695, %v370_v29  ;;  %v2484_v10 = vld [vmem:[%s2768_s2 + $0x8] sm:$0xff]   ;;  %v2492_v22 = vld [vmem:[%s2768_s2 + $0x10] sm:$0xff]  }
  0xbd   :  { %2096 = vpow2.f32 %v374_v26  ;;  %v386_v27 = vmul.f32 1.442695, %v371_v31  ;;  %v1616_v15 = vunpack.c.l.bf16 %v2479_v5  ;;  %v2778_v20 = vunpack.c.h.bf16 %v2479_v5  ;;  %v2508_v26 = vld [vmem:[%s2768_s2 + $0x18] sm:$0xff]  }
  0xbe   :  { %2098 = vpow2.f32 %v376_v28  ;;  %v2777_v21 = vunpack.c.l.bf16 %v2484_v10  ;;  %v2776_v23 = vunpack.c.h.bf16 %v2484_v10  ;;  %v2775_v25 = vunpack.c.l.bf16 %v2492_v22 }
  0xbf   :  { %2100 = vpow2.f32 %v378_v30  ;;  %v2774_v28 = vunpack.c.h.bf16 %v2492_v22  ;;  %v2773_v29 = vunpack.c.l.bf16 %v2508_v26  ;;  %v2772_v30 = vunpack.c.h.bf16 %v2508_v26 }
  0xc0   :  { %2102 = vpow2.f32 %v380_v33  ;;  %v1067_v16 = vmul.f32 1.442695, %v1057_v9  ;;  %v1069_v11 = vmul.f32 1.442695, %v1058_v62  ;;  %v1071_v36 = vmul.f32 1.442695, %v1059_v61 }
  0xc1   :  { %2104 = vpow2.f32 %v382_v34  ;;  %v1073_v35 = vmul.f32 1.442695, %v1060_v12  ;;  %v1077_v13 = vmul.f32 1.442695, %v1062_v14 }
  0xc2   :  { %2106 = vpow2.f32 %v384_v24 }
  0xc3   :  { %2108 = vpow2.f32 %v386_v27 }
  0xc6   :  { %v2424_v32 = vpop.eup %2094 }
  0xc7   :  { %v2426_v37 = vpop.eup %2096 }
  0xc8   :  { %v2428_v39 = vpop.eup %2098  ;;  %v1979_v40 = vpack.c.bf16 %v2426_v37, %v2424_v32 }
  0xc9   :  { %v2432_v41 = vpop.eup %2100 }
  0xca   :  { %v2434_v43 = vpop.eup %2102  ;;  %1980 = vmatprep.subr.bf16.mxu1 %v1979_v40  ;;  %v1983_v44 = vpack.c.bf16 %v2432_v41, %v2428_v39 }
  0xcb   :  { %v2438_v45 = vpop.eup %2104  ;;  %1982 = vmatpush3.bf16.msra.mxu1 %v1979_v40 }
  0xcc   :  { %1984 = vmatprep.subr.bf16.mxu1 %v1983_v44  ;;  %v2440_v46 = vpop.eup %2106  ;;  %v1987_v47 = vpack.c.bf16 %v2438_v45, %v2434_v43 }
  0xcd   :  { %v2444_v48 = vpop.eup %2108 }
  0xce   :  { %v1991_v49 = vpack.c.bf16 %v2444_v48, %v2440_v46 }
  0xcf   :  { %1986 = vmatpush3.bf16.msra.mxu1 %v1983_v44  ;;  %v2531_v44 = vld [vmem:[%s2767_s3 + $0x8] sm:$0xff]  }
  0xd0   :  { %1988 = vmatprep.subr.bf16.mxu1 %v1987_v47 }
  0xd3   :  { %1990 = vmatpush3.bf16.msra.mxu1 %v1987_v47  ;;  %v1633_v47 = vunpack.c.h.bf16 %v2470_v17 }
  0xd4   :  { %1992 = vmatprep.subr.bf16.mxu1 %v1991_v49 }
  0xd7   :  { %1994 = vmatpush3.bf16.msra.mxu1 %v1991_v49  ;;  %v2784_v49 = vunpack.c.l.bf16 %v2531_v44 }
  0xda   :  { %1802 = vmatmul.mubr.msk.f32.vlgmr.msra.gmra.mrb[0].mxu1 %vm342_vm8, %v2452_v52 }
  0xdb   :  { %1804 = vmatprep.mubr.msk.f32.mxu1 %vm342_vm8, %v2454_v53 }
  0xde   :  { %1805 = vmatmul.mubr.msk.f32.gmra.mrb[2].mxu1 %vm342_vm8, %v2458_v54 }
  0xdf   :  { %1835 = vmatprep.mubr.msk.f32.mxu1 %vm485_vm2, %v1616_v15 }
  0xe0   :  { %v1781_v56 = vpop.f32.mrb[0].mxu0 }
  0xe1   :  { %v199_v57 = vadd.f32 %v1781_v56, %v1546_v51  ;;  %v193_v58 = vpop.f32.mrb[1].mxu0  ;;  %v2782_v56 = vunpack.c.l.bf16 %v2538_v50 }
  0xe2   :  { %v194_v59 = vadd.f32 %v1546_v51, %v193_v58  ;;  %v2781_v58 = vunpack.c.h.bf16 %v2538_v50 }
  0xe4   :  { %v2003_v60 = vpack.c.bf16 %v199_v57, %v194_v59  ;;  %v1784_v63 = vpop.f32.mrb[2].mxu0  ;;  %v2551_v57 = vld [vmem:[%s2767_s3 + $0x18] sm:$0xff]  }
  0xe5   :  { %v209_v0 = vadd.f32 %v1784_v63, %v1546_v51  ;;  %v203_v1 = vpop.f32.mrb[3].mxu0  ;;  %v2780_v59 = vunpack.c.l.bf16 %v2551_v57  ;;  %v2789_v17 = vunpack.c.l.bf16 %v2551_v57 }
  0xe6   :  { %v204_v2 = vadd.f32 %v1546_v51, %v203_v1  ;;  %2004 = vmatprep.subr.bf16.mxu1 %v2003_v60  ;;  %v2783_v51 = vunpack.c.h.bf16 %v2531_v44 }
  0xe7   :  { %2006 = vmatpush3.bf16.msra.mxu1 %v2003_v60  ;;  %v2779_v60 = vunpack.c.h.bf16 %v2551_v57 }
  0xe8   :  { %v2007_v3 = vpack.c.bf16 %v209_v0, %v204_v2 }
  0xea   :  { %2008 = vmatprep.subr.bf16.mxu1 %v2007_v3 }
  0xeb   :  { %2010 = vmatpush3.bf16.msra.mxu1 %v2007_v3 }
  0xee   :  { %1836 = vmatmul.mubr.msk.f32.vlgmr.msra.gmra.mrb[4].mxu1 %vm485_vm2, %v2778_v20 }
  0xef   :  { %1838 = vmatprep.mubr.msk.f32.mxu1 %vm485_vm2, %v2777_v21 }
  0xf2   :  { %1839 = vmatmul.mubr.msk.f32.gmra.mrb[6].mxu1 %vm485_vm2, %v2776_v23 }
  0xf3   :  { %1841 = vmatprep.mubr.msk.f32.mxu1 %vm485_vm2, %v2775_v25 }
  0xf6   :  { %1842 = vmatmul.mubr.msk.f32.gmra.mrb[8].mxu1 %vm485_vm2, %v2774_v28 }
  0xf7   :  { %1844 = vmatprep.mubr.msk.f32.mxu1 %vm485_vm2, %v2773_v29 }
  0xfa   :  { %1845 = vmatmul.mubr.msk.f32.gmra.mrb[10].mxu1 %vm485_vm2, %v2772_v30 }
 0x1ad   :  { %v1803_v31 = vpop.f32.mrb[0].mxu1 }
 0x1ae   :  { %v466_v33 = vpop.f32.mrb[1].mxu1 }
 0x1af   :  { %v1995_v34 = vpack.c.bf16 %v1803_v31, %v466_v33 }
 0x1b1   :  { %v1806_v24 = vpop.f32.mrb[2].mxu1  ;;  %1996 = vmatprep.subr.bf16.mxu0 %v1995_v34 }
 0x1b2   :  { %v476_v27 = vpop.f32.mrb[3].mxu1  ;;  %1998 = vmatpush3.bf16.msra.mxu0 %v1995_v34 }
 0x1b3   :  { %v1999_v40 = vpack.c.bf16 %v1806_v24, %v476_v27 }
 0x1b5   :  { %2000 = vmatprep.subr.bf16.mxu0 %v1999_v40 }
 0x1b6   :  { %2002 = vmatpush3.bf16.msra.mxu0 %v1999_v40 }
 0x1b9   :  { %1816 = vmatmul.mubr.msk.f32.vlgmr.msra.gmra.mrb[4].mxu0 %vm485_vm2, %v1633_v47 }
 0x1ba   :  { %1818 = vmatprep.mubr.msk.f32.mxu0 %vm485_vm2, %v2784_v49 }
 0x1bd   :  { %1819 = vmatmul.mubr.msk.f32.gmra.mrb[6].mxu0 %vm485_vm2, %v2783_v51 }
 0x1be   :  { %1821 = vmatprep.mubr.msk.f32.mxu0 %vm485_vm2, %v2782_v56 }
 0x1c1   :  { %1822 = vmatmul.mubr.msk.f32.gmra.mrb[8].mxu0 %vm485_vm2, %v2781_v58  ;;  %v1837_v63 = vpop.f32.mrb[4].mxu1 }
 0x1c2   :  { %1824 = vmatprep.mubr.msk.f32.mxu0 %vm485_vm2, %v2780_v59  ;;  %v729_v0 = vpop.f32.mrb[5].mxu1 }
 0x1c5   :  { %1825 = vmatmul.mubr.msk.f32.gmra.mrb[10].mxu0 %vm485_vm2, %v2779_v60  ;;  %v1840_v1 = vpop.f32.mrb[6].mxu1 }
 0x1c6   :  { %1863 = vmatprep.mubr.msk.f32.mxu0 %vm342_vm8, %v2293_v18  ;;  %v739_v2 = vpop.f32.mrb[7].mxu1 }
 0x1c9   :  { %v1843_v3 = vpop.f32.mrb[8].mxu1 }
 0x1ca   :  { %v749_v31 = vpop.f32.mrb[9].mxu1 }
 0x1cd   :  { %v2573_v33 = vpop.f32.mrb[10].mxu1 }
 0x1ce   :  { %v2575_v34 = vpop.f32.mrb[11].mxu1 }
 0x28c   :  { %v1817_v24 = vpop.f32.mrb[4].mxu0 }
 0x28d   :  { %v616_v27 = vmax.f32 %v1817_v24, 1e-30  ;;  %v576_v40 = vpop.f32.mrb[5].mxu0 }
 0x28e   :  { %v615_v30 = vmax.f32 %v576_v40, 1e-30 }
 0x28f   :  { %2110 = vrcp.f32 %v616_v27  ;;  %v885_v27 = vld [vmem:[%s2769_s10] sm:$0xff] }
 0x290   :  { %2112 = vrcp.f32 %v615_v30  ;;  %v1820_v29 = vpop.f32.mrb[6].mxu0 }
 0x291   :  { %v618_v28 = vmax.f32 %v1820_v29, 1e-30  ;;  %v586_v25 = vpop.f32.mrb[7].mxu0 }
 0x292   :  { %v617_v23 = vmax.f32 %v586_v25, 1e-30 }
 0x293   :  { %2114 = vrcp.f32 %v618_v28 }
 0x294   :  { %2116 = vrcp.f32 %v617_v23  ;;  %v1823_v21 = vpop.f32.mrb[8].mxu0  ;;  %v1063_v23 = vmul.f32 1.442695, %v1055_v7 }
 0x295   :  { %v620_v20 = vmax.f32 %v1823_v21, 1e-30  ;;  %v596_v60 = vpop.f32.mrb[9].mxu0 }
 0x296   :  { %v619_v59 = vmax.f32 %v596_v60, 1e-30 }
 0x297   :  { %2118 = vrcp.f32 %v620_v20  ;;  %v1065_v20 = vmul.f32 1.442695, %v1056_v8 }
 0x298   :  { %2120 = vrcp.f32 %v619_v59  ;;  %v1826_v58 = vpop.f32.mrb[10].mxu0 }
 0x299   :  { %v2111_v56 = vpop.eup %2110  ;;  %v622_v51 = vmax.f32 %v1826_v58, 1e-30  ;;  %v606_v24 = vpop.f32.mrb[11].mxu0 }
 0x29a   :  { %v2113_v49 = vpop.eup %2112  ;;  %v621_v40 = vmax.f32 %v606_v24, 1e-30  ;;  %v632_v30 = vmul.f32 %v2111_v56, %v2426_v37  ;;  %v886_v24 = vld [vmem:[%s2769_s10 + $0x8] sm:$0xff] }
 0x29b   :  { %2122 = vrcp.f32 %v622_v51  ;;  %v631_v29 = vmul.f32 %v2113_v49, %v2424_v32 }
 0x29c   :  { %2124 = vrcp.f32 %v621_v40  ;;  %v769_v21 = vmul.f32 %v1837_v63, %v632_v30  ;;  %v2027_v40 = vpack.c.bf16 %v886_v24, %v885_v27  ;;  %v887_v30 = vld [vmem:[%s2769_s10 + $0x10] sm:$0xff]  ;;  %v2785_v27 = vunpack.c.l.bf16 %v2531_v44 }
 0x29d   :  { %v2115_v25 = vpop.eup %2114  ;;  %v768_v28 = vmul.f32 %v729_v0, %v631_v29  ;;  %2126 = vpow2.f32 %v1063_v23  ;;  %v888_v29 = vld [vmem:[%s2769_s10 + $0x18] sm:$0xff]  ;;  %v889_v23 = vld [vmem:[%s2769_s10 + $0x20] sm:$0xff]  ;;  %v2786_v24 = vunpack.c.h.bf16 %v2531_v44 }
 0x29e   :  { %v2117_v58 = vpop.eup %2116  ;;  %v634_v59 = vmul.f32 %v2115_v25, %v2432_v41  ;;  %2128 = vpow2.f32 %v1065_v20  ;;  %2028 = vmatprep.subr.bf16.mxu1 %v2027_v40  ;;  %v891_v20 = vld [vmem:[%s2769_s10 + $0x30] sm:$0xff]  ;;  %v1582_v44 = vld [vmem:[%s2770_s11] ss:$0 sm:$0xff] }
 0x29f   :  { %v2011_v60 = vpack.c.bf16 %v769_v21, %v768_v28  ;;  %v633_v37 = vmul.f32 %v2117_v58, %v2428_v39  ;;  %2130 = vpow2.f32 %v1067_v16  ;;  %2030 = vmatpush3.bf16.msra.mxu1 %v2027_v40  ;;  %v890_v21 = vld [vmem:[%s2769_s10 + $0x28] sm:$0xff]  ;;  %v892_v28 = vld [vmem:[%s2769_s10 + $0x38] sm:$0xff]  ;;  %v2787_v40 = vunpack.c.l.bf16 %v2538_v50 }
 0x2a0   :  { %v771_v7 = vmul.f32 %v1840_v1, %v634_v59  ;;  %2132 = vpow2.f32 %v1069_v11  ;;  %v2035_v25 = vpack.c.bf16 %v890_v21, %v889_v23  ;;  %v2039_v58 = vpack.c.bf16 %v892_v28, %v891_v20 }
 0x2a1   :  { %v2119_v8 = vpop.eup %2118  ;;  %v770_v32 = vmul.f32 %v739_v2, %v633_v37  ;;  %2012 = vmatprep.subr.bf16.mxu0 %v2011_v60  ;;  %2134 = vpow2.f32 %v1071_v36 }
 0x2a2   :  { %v2121_v49 = vpop.eup %2120  ;;  %v636_v41 = vmul.f32 %v2119_v8, %v2438_v45  ;;  %2014 = vmatpush3.bf16.msra.mxu0 %v2011_v60  ;;  %2136 = vpow2.f32 %v1073_v35 }
 0x2a3   :  { %v2015_v51 = vpack.c.bf16 %v771_v7, %v770_v32  ;;  %v635_v39 = vmul.f32 %v2121_v49, %v2434_v43  ;;  %v1075_v43 = vmul.f32 1.442695, %v1061_v6 }
 0x2a4   :  { %v773_v9 = vmul.f32 %v1843_v3, %v636_v41 }
 0x2a5   :  { %v2123_v62 = vpop.eup %2122  ;;  %v772_v56 = vmul.f32 %v749_v31, %v635_v39  ;;  %2016 = vmatprep.subr.bf16.mxu0 %v2015_v51  ;;  %2138 = vpow2.f32 %v1075_v43 }
 0x2a6   :  { %v2125_v63 = vpop.eup %2124  ;;  %v638_v45 = vmul.f32 %v2123_v62, %v2444_v48  ;;  %2018 = vmatpush3.bf16.msra.mxu0 %v2015_v51  ;;  %2140 = vpow2.f32 %v1077_v13 }
 0x2a7   :  { %v2019_v0 = vpack.c.bf16 %v773_v9, %v772_v56  ;;  %v637_v19 = vmul.f32 %v2125_v63, %v2440_v46  ;;  %v2610_v12 = vpop.eup %2126 }
 0x2a8   :  { %v775_v61 = vmul.f32 %v2573_v33, %v638_v45  ;;  %v2613_v1 = vpop.eup %2128 }
 0x2a9   :  { %v774_v48 = vmul.f32 %v2575_v34, %v637_v19  ;;  %2020 = vmatprep.subr.bf16.mxu0 %v2019_v0  ;;  %v2615_v6 = vpop.eup %2130  ;;  %v2043_v46 = vpack.c.bf16 %v2613_v1, %v2610_v12 }
 0x2aa   :  { %2022 = vmatpush3.bf16.msra.mxu0 %v2019_v0  ;;  %v2619_v2 = vpop.eup %2132 }
 0x2ab   :  { %v2023_v42 = vpack.c.bf16 %v775_v61, %v774_v48  ;;  %v2621_v38 = vpop.eup %2134  ;;  %v2047_v4 = vpack.c.bf16 %v2619_v2, %v2615_v6 }
 0x2ac   :  { %v2627_v14 = vpop.eup %2136 }
 0x2ad   :  { %2024 = vmatprep.subr.bf16.mxu0 %v2023_v42  ;;  %v2051_v31 = vpack.c.bf16 %v2627_v14, %v2621_v38 }
 0x2ae   :  { %2026 = vmatpush3.bf16.msra.mxu0 %v2023_v42 }
 0x2af   :  { %2044 = vmatprep.subr.bf16.mxu0 %v2043_v46  ;;  %v2631_v3 = vpop.eup %2138 }
 0x2b0   :  { %v2637_v33 = vpop.eup %2140 }
 0x2b1   :  { %1864 = vmatmul.mubr.msk.f32.vlgmr.msra.gmra.mrb[12].mxu0 %vm342_vm8, %v2452_v52  ;;  %v2055_v34 = vpack.c.bf16 %v2637_v33, %v2631_v3 }
 0x2b2   :  { %2046 = vmatpush3.bf16.msra.mxu0 %v2043_v46  ;;  %1866 = vmatprep.mubr.msk.f32.mxu0 %vm342_vm8, %v2454_v53 }
 0x2b3   :  { %2048 = vmatprep.subr.bf16.mxu0 %v2047_v4 }
 0x2b5   :  { %1867 = vmatmul.mubr.msk.f32.gmra.mrb[14].mxu0 %vm342_vm8, %v2458_v54 }
 0x2b6   :  { %2050 = vmatpush3.bf16.msra.mxu0 %v2047_v4  ;;  %1907 = vmatprep.mubr.msk.f32.mxu0 %vm342_vm8, %v2293_v18 }
 0x2b7   :  { %2052 = vmatprep.subr.bf16.mxu0 %v2051_v31 }
 0x2ba   :  { %2054 = vmatpush3.bf16.msra.mxu0 %v2051_v31 }
 0x2bb   :  { %2056 = vmatprep.subr.bf16.mxu0 %v2055_v34 }
 0x2be   :  { %2058 = vmatpush3.bf16.msra.mxu0 %v2055_v34 }
 0x2c1   :  { %1908 = vmatmul.mubr.msk.f32.vlgmr.msra.gmra.mrb[16].mxu0 %vm342_vm8, %v2452_v52 }
 0x2c2   :  { %1910 = vmatprep.mubr.msk.f32.mxu0 %vm342_vm8, %v2454_v53 }
 0x2c5   :  { %1911 = vmatmul.mubr.msk.f32.gmra.mrb[18].mxu0 %vm342_vm8, %v2458_v54 }
 0x2c6   :  { %1941 = vmatprep.mubr.msk.f32.mxu0 %vm485_vm2, %v1616_v15  ;;  %v2031_v15 = vpack.c.bf16 %v888_v29, %v887_v30  ;;  %v2788_v30 = vunpack.c.h.bf16 %v2538_v50 }
 0x2c8   :  { %2032 = vmatprep.subr.bf16.mxu1 %v2031_v15 }
 0x2c9   :  { %2034 = vmatpush3.bf16.msra.mxu1 %v2031_v15 }
 0x2ca   :  { %2036 = vmatprep.subr.bf16.mxu1 %v2035_v25 }
 0x2cd   :  { %2038 = vmatpush3.bf16.msra.mxu1 %v2035_v25 }
 0x2ce   :  { %2040 = vmatprep.subr.bf16.mxu1 %v2039_v58 }
 0x2d1   :  { %2042 = vmatpush3.bf16.msra.mxu1 %v2039_v58 }
 0x384   :  { %v1865_v59 = vpop.f32.mrb[12].mxu0 }
 0x385   :  { %v866_v60 = vmin.f32 %v1865_v59, 0.0  ;;  %v842_v37 = vpop.f32.mrb[13].mxu0  ;;  %vm862_vm4 = vcmp.gt.f32.partialorder %v1865_v59, 0.0 }
 0x386   :  { %v865_v16 = vmin.f32 %v842_v37, 0.0  ;;  %vm861_vm3 = vcmp.gt.f32.partialorder %v842_v37, 0.0 }
 0x387   :  { %v871_v7 = vmul.f32 1.442695, %v866_v60 }
 0x388   :  { %v869_v11 = vmul.f32 1.442695, %v865_v16  ;;  %v1868_v8 = vpop.f32.mrb[14].mxu0  ;;  %v2792_v16 = vunpack.c.l.bf16 %v2484_v10 }
 0x389   :  { %2142 = vpow2.f32 %v871_v7  ;;  %v868_v32 = vmin.f32 %v1868_v8, 0.0  ;;  %v852_v49 = vpop.f32.mrb[15].mxu0  ;;  %vm864_vm6 = vcmp.gt.f32.partialorder %v1868_v8, 0.0 }
 0x38a   :  { %2144 = vpow2.f32 %v869_v11  ;;  %v867_v41 = vmin.f32 %v852_v49, 0.0  ;;  %vm863_vm5 = vcmp.gt.f32.partialorder %v852_v49, 0.0 }
 0x38b   :  { %v875_v51 = vmul.f32 1.442695, %v868_v32  ;;  %v2794_v32 = vunpack.c.l.bf16 %v2492_v22 }
 0x38c   :  { %v873_v39 = vmul.f32 1.442695, %v867_v41 }
 0x38d   :  { %2146 = vpow2.f32 %v875_v51  ;;  %v2796_v51 = vunpack.c.l.bf16 %v2508_v26 }
 0x38e   :  { %2148 = vpow2.f32 %v873_v39  ;;  %v2797_v39 = vunpack.c.h.bf16 %v2508_v26 }
 0x393   :  { %v2143_v36 = vpop.eup %2142 }
 0x394   :  { %v2145_v9 = vpop.eup %2144  ;;  %v1579_v35 = vadd.f32 -1.0, %v2143_v36  ;;  %v1909_v62 = vpop.f32.mrb[16].mxu0 }
 0x395   :  { %v1578_v56 = vadd.f32 -1.0, %v2145_v9  ;;  %v1145_v63 = vpop.f32.mrb[17].mxu0 }
 0x396   :  { %v2059_v45 = vpack.c.bf16 %v1909_v62, %v1145_v63  ;;  %v882_v61 = vsel %vm862_vm4, %v1865_v59, %v1579_v35 }
 0x397   :  { %v2147_v43 = vpop.eup %2146  ;;  %v881_v0 = vsel %vm861_vm3, %v842_v37, %v1578_v56  ;;  %v2791_v37 = vunpack.c.h.bf16 %v2479_v5  ;;  %v2795_v5 = vunpack.c.h.bf16 %v2492_v22 }
 0x398   :  { %v2149_v19 = vpop.eup %2148  ;;  %v1581_v13 = vadd.f32 -1.0, %v2147_v43  ;;  %1885 = vmatprep.mubr.msk.f32.mxu1 %vm342_vm8, %v881_v0  ;;  %v1912_v48 = vpop.f32.mrb[18].mxu0  ;;  %2060 = vmatprep.subr.bf16.mxu1 %v2059_v45 }
 0x399   :  { %v1580_v42 = vadd.f32 -1.0, %v2149_v19  ;;  %1886 = vmatmul.mubr.msk.f32.vlgmr.msra.gmra.mrb[12].mxu1 %vm342_vm8, %v882_v61  ;;  %v1155_v46 = vpop.f32.mrb[19].mxu0 }
 0x39a   :  { %v2063_v4 = vpack.c.bf16 %v1912_v48, %v1155_v46  ;;  %2062 = vmatpush3.bf16.msra.mxu1 %v2059_v45  ;;  %v884_v34 = vsel %vm864_vm6, %v1868_v8, %v1581_v13  ;;  %v2793_v8 = vunpack.c.h.bf16 %v2484_v10 }
 0x39b   :  { %v883_v31 = vsel %vm863_vm5, %v852_v49, %v1580_v42 }
 0x39c   :  { %1888 = vmatprep.mubr.msk.f32.mxu1 %vm342_vm8, %v883_v31  ;;  %2064 = vmatprep.subr.bf16.mxu1 %v2063_v4 }
 0x39d   :  { %1889 = vmatmul.mubr.msk.f32.gmra.mrb[14].mxu1 %vm342_vm8, %v884_v34 }
 0x39e   :  { %2066 = vmatpush3.bf16.msra.mxu1 %v2063_v4  ;;  %1921 = vmatprep.mubr.msk.f32.mxu1 %vm485_vm2, %v1632_v55  ;;  %v2790_v55 = vunpack.c.h.bf16 %v2551_v57 }
 0x3a1   :  { %1922 = vmatmul.mubr.msk.f32.vlgmr.msra.gmra.mrb[16].mxu1 %vm485_vm2, %v1633_v47 }
 0x3a2   :  { %1924 = vmatprep.mubr.msk.f32.mxu1 %vm485_vm2, %v2785_v27 }
 0x3a5   :  { %1925 = vmatmul.mubr.msk.f32.gmra.mrb[18].mxu1 %vm485_vm2, %v2786_v24 }
 0x3a6   :  { %1927 = vmatprep.mubr.msk.f32.mxu1 %vm485_vm2, %v2787_v40 }
 0x3a9   :  { %1928 = vmatmul.mubr.msk.f32.gmra.mrb[20].mxu1 %vm485_vm2, %v2788_v30 }
 0x3aa   :  { %1930 = vmatprep.mubr.msk.f32.mxu1 %vm485_vm2, %v2789_v17 }
 0x3ad   :  { %1931 = vmatmul.mubr.msk.f32.gmra.mrb[22].mxu1 %vm485_vm2, %v2790_v55 }
 0x3ae   :  { %1969 = vmatprep.mubr.msk.f32.mxu1 %vm342_vm8, %v2293_v18 }
 0x46c   :  { %v1887_v47 = vpop.f32.mrb[12].mxu1 }
 0x46d   :  { %v987_v29 = vadd.f32 %v1887_v47, %v1582_v44  ;;  %v981_v50 = vpop.f32.mrb[13].mxu1 }
 0x46e   :  { %v982_v15 = vadd.f32 %v1582_v44, %v981_v50 }
 0x470   :  { %v2067_v23 = vpack.c.bf16 %v987_v29, %v982_v15  ;;  %v1890_v21 = vpop.f32.mrb[14].mxu1 }
 0x471   :  { %v997_v20 = vadd.f32 %v1890_v21, %v1582_v44  ;;  %v991_v25 = vpop.f32.mrb[15].mxu1 }
 0x472   :  { %v992_v28 = vadd.f32 %v1582_v44, %v991_v25  ;;  %2068 = vmatprep.subr.bf16.mxu0 %v2067_v23 }
 0x473   :  { %2070 = vmatpush3.bf16.msra.mxu0 %v2067_v23 }
 0x474   :  { %v2071_v57 = vpack.c.bf16 %v997_v20, %v992_v28  ;;  %v1923_v58 = vpop.f32.mrb[16].mxu1 }
 0x475   :  { %v1230_v59 = vpop.f32.mrb[17].mxu1  ;;  %v1270_v10 = vmax.f32 %v1923_v58, 1e-30 }
 0x476   :  { %2072 = vmatprep.subr.bf16.mxu0 %v2071_v57  ;;  %v1269_v36 = vmax.f32 %v1230_v59, 1e-30 }
 0x477   :  { %2074 = vmatpush3.bf16.msra.mxu0 %v2071_v57  ;;  %2150 = vrcp.f32 %v1270_v10 }
 0x478   :  { %v1926_v18 = vpop.f32.mrb[18].mxu1  ;;  %2152 = vrcp.f32 %v1269_v36 }
 0x479   :  { %v1240_v60 = vpop.f32.mrb[19].mxu1  ;;  %v1272_v9 = vmax.f32 %v1926_v18, 1e-30 }
 0x47a   :  { %1942 = vmatmul.mubr.msk.f32.vlgmr.msra.gmra.mrb[20].mxu0 %vm485_vm2, %v2791_v37  ;;  %v1271_v35 = vmax.f32 %v1240_v60, 1e-30 }
 0x47b   :  { %1944 = vmatprep.mubr.msk.f32.mxu0 %vm485_vm2, %v2792_v16  ;;  %2154 = vrcp.f32 %v1272_v9 }
 0x47c   :  { %v1929_v7 = vpop.f32.mrb[20].mxu1  ;;  %2156 = vrcp.f32 %v1271_v35 }
 0x47d   :  { %v1250_v11 = vpop.f32.mrb[21].mxu1  ;;  %v1274_v62 = vmax.f32 %v1929_v7, 1e-30 }
 0x47e   :  { %1945 = vmatmul.mubr.msk.f32.gmra.mrb[22].mxu0 %vm485_vm2, %v2793_v8  ;;  %v1273_v22 = vmax.f32 %v1250_v11, 1e-30 }
 0x47f   :  { %1947 = vmatprep.mubr.msk.f32.mxu0 %vm485_vm2, %v2794_v32  ;;  %2158 = vrcp.f32 %v1274_v62 }
 0x480   :  { %v1932_v49 = vpop.f32.mrb[22].mxu1  ;;  %2160 = vrcp.f32 %v1273_v22 }
 0x481   :  { %v1260_v41 = vpop.f32.mrb[23].mxu1  ;;  %v1276_v56 = vmax.f32 %v1932_v49, 1e-30  ;;  %v2151_v45 = vpop.eup %2150 }
 0x482   :  { %1948 = vmatmul.mubr.msk.f32.gmra.mrb[24].mxu0 %vm485_vm2, %v2795_v5  ;;  %v1275_v63 = vmax.f32 %v1260_v41, 1e-30  ;;  %v2153_v43 = vpop.eup %2152  ;;  %v1286_v26 = vmul.f32 %v2151_v45, %v2613_v1 }
 0x483   :  { %1950 = vmatprep.mubr.msk.f32.mxu0 %vm485_vm2, %v2796_v51  ;;  %2162 = vrcp.f32 %v1276_v56  ;;  %v1285_v61 = vmul.f32 %v2153_v43, %v2610_v12 }
 0x484   :  { %2164 = vrcp.f32 %v1275_v63 }
 0x485   :  { %v2155_v0 = vpop.eup %2154 }
 0x486   :  { %1951 = vmatmul.mubr.msk.f32.gmra.mrb[26].mxu0 %vm485_vm2, %v2797_v39  ;;  %v2157_v13 = vpop.eup %2156  ;;  %v1288_v4 = vmul.f32 %v2155_v0, %v2619_v2 }
 0x487   :  { %v1287_v24 = vmul.f32 %v2157_v13, %v2615_v6 }
 0x489   :  { %v2159_v31 = vpop.eup %2158 }
 0x48a   :  { %v2161_v40 = vpop.eup %2160  ;;  %v1290_v1 = vmul.f32 %v2159_v31, %v2627_v14 }
 0x48b   :  { %v1289_v29 = vmul.f32 %v2161_v40, %v2621_v38  ;;  %v1491_v38 = vlaneseq }
 0x48d   :  { %v2163_v12 = vpop.eup %2162 }
 0x48e   :  { %v2165_v50 = vpop.eup %2164  ;;  %v1292_v6 = vmul.f32 %v2163_v12, %v2637_v33  ;;  %v1492_v33 = vand.u32 127, %v1491_v38 }
 0x48f   :  { %v1291_v25 = vmul.f32 %v2165_v50, %v2631_v3 }
 0x490   :  { %vm1493_vm7 = vcmp.lt.s32.totalorder %v1492_v33, 8 }
 0x54d   :  { %v1943_v19 = vpop.f32.mrb[20].mxu0 }
 0x54e   :  { %v1399_v48 = vmul.f32 %v1943_v19, %v1286_v26  ;;  %v1359_v42 = vpop.f32.mrb[21].mxu0 }
 0x54f   :  { %v1398_v46 = vmul.f32 %v1359_v42, %v1285_v61 }
 0x551   :  { %v2075_v34 = vpack.c.bf16 %v1399_v48, %v1398_v46  ;;  %v1946_v27 = vpop.f32.mrb[22].mxu0 }
 0x552   :  { %v1401_v30 = vmul.f32 %v1946_v27, %v1288_v4  ;;  %v1369_v17 = vpop.f32.mrb[23].mxu0 }
 0x553   :  { %v1400_v55 = vmul.f32 %v1369_v17, %v1287_v24  ;;  %2076 = vmatprep.subr.bf16.mxu1 %v2075_v34 }
 0x554   :  { %2078 = vmatpush3.bf16.msra.mxu1 %v2075_v34 }
 0x555   :  { %v2079_v44 = vpack.c.bf16 %v1401_v30, %v1400_v55  ;;  %v1949_v47 = vpop.f32.mrb[24].mxu0 }
 0x556   :  { %v1403_v2 = vmul.f32 %v1949_v47, %v1290_v1  ;;  %v1379_v15 = vpop.f32.mrb[25].mxu0 }
 0x557   :  { %v1402_v23 = vmul.f32 %v1379_v15, %v1289_v29  ;;  %2080 = vmatprep.subr.bf16.mxu1 %v2079_v44 }
 0x558   :  { %2082 = vmatpush3.bf16.msra.mxu1 %v2079_v44 }
 0x559   :  { %v2083_v21 = vpack.c.bf16 %v1403_v2, %v1402_v23  ;;  %v1952_v20 = vpop.f32.mrb[26].mxu0 }
 0x55a   :  { %v1405_v28 = vmul.f32 %v1952_v20, %v1292_v6  ;;  %v1389_v57 = vpop.f32.mrb[27].mxu0 }
 0x55b   :  { %v1404_v14 = vmul.f32 %v1389_v57, %v1291_v25  ;;  %2084 = vmatprep.subr.bf16.mxu1 %v2083_v21 }
 0x55c   :  { %2086 = vmatpush3.bf16.msra.mxu1 %v2083_v21 }
 0x55d   :  { %v2087_v58 = vpack.c.bf16 %v1405_v28, %v1404_v14 }
 0x55f   :  { %2088 = vmatprep.subr.bf16.mxu1 %v2087_v58 }
 0x560   :  { %2090 = vmatpush3.bf16.msra.mxu1 %v2087_v58 }
 0x563   :  { %1970 = vmatmul.mubr.msk.f32.vlgmr.msra.gmra.mrb[24].mxu1 %vm342_vm8, %v2452_v52 }
 0x564   :  { %1972 = vmatprep.mubr.msk.f32.mxu1 %vm342_vm8, %v2454_v53 }
 0x567   :  { %1973 = vmatmul.mubr.msk.f32.gmra.mrb[26].mxu1 %vm342_vm8, %v2458_v54 }
 0x636   :  { %v1971_v3 = vpop.f32.mrb[24].mxu1 }
 0x637   :  { %v1472_v59 = vpop.f32.mrb[25].mxu1  ;;  %v1495_v18 = vsel %vm1493_vm7, %v1971_v3, -1e+30 }
 0x638   :  { %1500 = vmax.xlane.f32.xlu1 %v1495_v18  ;;  %v1494_v60 = vsel %vm1493_vm7, %v1472_v59, -1e+30 }
 0x639   :  { %1498 = vmax.xlane.f32.xlu0 %v1494_v60 }
 0x63a   :  { %v1974_v37 = vpop.f32.mrb[26].mxu1 }
 0x63b   :  { %v1482_v16 = vpop.f32.mrb[27].mxu1  ;;  %v1497_v52 = vsel %vm1493_vm7, %v1974_v37, -1e+30 }
 0x63c   :  { %v1496_v7 = vsel %vm1493_vm7, %v1482_v16, -1e+30 }
 0x63d   :  { %1502 = vmax.xlane.f32.xlu0 %v1496_v7 }
 0x641   :  { %1504 = vmax.xlane.f32.xlu0 %v1497_v52 }
 0x6c5   :  { %v1501_v11 = vpop.xlane.xlu1 %1500 }
 0x6c6   :  { %v1507_v53 = vsub.f32 %v1495_v18, %v1501_v11  ;;  %v1499_v8 = vpop.xlane.xlu0 %1498 }
 0x6c7   :  { %v1506_v32 = vsub.f32 %v1494_v60, %v1499_v8 }
 0x6c8   :  { %v1512_v54 = vmul.f32 1.442695, %v1507_v53 }
 0x6c9   :  { %v1510_v49 = vmul.f32 1.442695, %v1506_v32 }
 0x6ca   :  { %2166 = vpow2.f32 %v1512_v54  ;;  %v1503_v41 = vpop.xlane.xlu0 %1502 }
 0x6cb   :  { %2168 = vpow2.f32 %v1510_v49  ;;  %v1508_v5 = vsub.f32 %v1496_v7, %v1503_v41 }
 0x6cd   :  { %v1514_v51 = vmul.f32 1.442695, %v1508_v5 }
 0x6ce   :  { %v1505_v39 = vpop.xlane.xlu0 %1504 }
 0x6cf   :  { %2170 = vpow2.f32 %v1514_v51  ;;  %v1509_v10 = vsub.f32 %v1497_v52, %v1505_v39 }
 0x6d1   :  { %v1516_v36 = vmul.f32 1.442695, %v1509_v10 }
 0x6d3   :  { %2172 = vpow2.f32 %v1516_v36 }
 0x6d4   :  { %v2167_v9 = vpop.eup %2166 }
 0x6d5   :  { %v2169_v35 = vpop.eup %2168  ;;  %1520 = vadd.xlane.f32.xlu0 %v2167_v9 }
 0x6d6   :  { %1518 = vadd.xlane.f32.xlu1 %v2169_v35 }
 0x6d9   :  { %v2171_v62 = vpop.eup %2170 }
 0x6da   :  { %1522 = vadd.xlane.f32.xlu1 %v2171_v62 }
 0x6dd   :  { %v2173_v22 = vpop.eup %2172 }
 0x6de   :  { %1524 = vadd.xlane.f32.xlu0 %v2173_v22 }
 0x762   :  { %v1521_v56 = vpop.xlane.xlu0 %1520 }
 0x763   :  { %2174 = vlog2.f32 %v1521_v56  ;;  %v1519_v63 = vpop.xlane.xlu1 %1518 }
 0x764   :  { %2176 = vlog2.f32 %v1519_v63 }
 0x767   :  { %v1523_v45 = vpop.xlane.xlu1 %1522 }
 0x768   :  { %2178 = vlog2.f32 %v1523_v45 }
 0x76b   :  { %v1525_v43 = vpop.xlane.xlu0 %1524 }
 0x76c   :  { %2180 = vlog2.f32 %v1525_v43 }
 0x76d   :  { %v2175_v26 = vpop.eup %2174 }
 0x76e   :  { %v2177_v0 = vpop.eup %2176  ;;  %v1529_v19 = vmul.f32 0.6931472, %v2175_v26 }
 0x76f   :  { %v1527_v61 = vmul.f32 0.6931472, %v2177_v0 }
 0x770   :  { %v1535_v13 = vsub.f32 %v1507_v53, %v1529_v19 }
 0x771   :  { %v1534_v48 = vsub.f32 %v1506_v32, %v1527_v61 }
 0x772   :  { %v2179_v42 = vpop.eup %2178  ;;  %1539 = vst [vmem:[%s2771_s15 + $0x8] sm:$0xff] %v1535_v13 }
 0x773   :  { %1538 = vst [vmem:[%s2771_s15] sm:$0xff] %v1534_v48  ;;  %v1531_v46 = vmul.f32 0.6931472, %v2179_v42 }
 0x775   :  { %v1536_v4 = vsub.f32 %v1508_v5, %v1531_v46 }
 0x776   :  { %v2181_v31 = vpop.eup %2180 }
 0x777   :  { %1540 = vst [vmem:[%s2771_s15 + $0x10] sm:$0xff] %v1536_v4  ;;  %v1533_v34 = vmul.f32 0.6931472, %v2181_v31 }
 0x779   :  { %v1537_v27 = vsub.f32 %v1509_v10, %v1533_v34 }
 0x77b   :  { %1541 = vst [vmem:[%s2771_s15 + $0x18] sm:$0xff] %v1537_v27 }

</bundles_post_ra>
